<compile_context>
chip_gen: v6e
topology: v6e:2x2x1
jax: 0.10.0
libtpu: 0.0.40
codegen_flags: <defaults>
</compile_context>

<pallas_src>
import functools

import jax
import jax.numpy as jnp
from jax import lax
from jax.experimental import pallas as pl
from jax.experimental.pallas import tpu as pltpu


# ---------------------------------------------------------------------------
# Helpers
# ---------------------------------------------------------------------------

def _derive_block_b(batch, seq, hidden):
    """Batch rows per grid step, sized from a VMEM budget (double-buffered enc block plus
    one live f32 intermediate), rounded to the (8, .) sublane tile, and kept <= ~B/2 so a
    2-TensorCore chip (v7x) gets >= 2 parallel grid steps."""
    if batch <= 8:
        return batch                              # block == full batch dim (tiling rule ok)
    vmem_budget = 40 * 1024 * 1024                # headroom under v7x's 64 MiB physical VMEM
    per_row = 3 * seq * hidden * 4                # 2x double-buffered enc + 1x live value
    bb = vmem_budget // max(per_row, 1)
    bb = max(8, min(bb, 256, batch))
    half = (((batch + 1) // 2) + 7) // 8 * 8      # >= 2 parallel grid steps (megacore)
    bb = min(bb, half)
    # TODO(synk): for extreme S*H where even 8 batch rows overflow VMEM, 'dot'/'general'
    # would also need an S grid axis with a running-max online softmax.
    return max(8, (bb // 8) * 8)


def _pick_s_chunk(seq):
    """S-chunk for 'concat' so the (Bb, chunk, H) energy intermediate stays bounded."""
    if seq <= 512:
        return seq
    for c in (512, 256, 128):
        if seq % c == 0:
            return c
    return seq  # TODO(synk): ragged S chunking for long, non-128-multiple sequences


def _const_index_map(ndim):
    return lambda i: (0,) * ndim


def _masked_softmax_store(scores_bs, out_ref):
    """scores_bs: (Bb, S) f32.  Writes softmax over the valid S columns into the
    lane-dense (Bb, S_pad) out_ref; padding lanes get exp(-1e30) = 0.  Exact divide so
    every row sums to 1 (to f32 rounding)."""
    bb, s = scores_bs.shape
    s_pad = out_ref.shape[-1]
    if s_pad > s:
        pad = jnp.full((bb, s_pad - s), -1e30, dtype=jnp.float32)
        scores_bs = jnp.concatenate([scores_bs, pad], axis=-1)
    m = jnp.max(scores_bs, axis=-1, keepdims=True)
    ex = jnp.exp(scores_bs - m)
    den = jnp.sum(ex, axis=-1, keepdims=True)
    out_ref[...] = (ex / den).astype(out_ref.dtype)


# ---------------------------------------------------------------------------
# Kernels.  Per-grid-step refs:
#   enc_ref : (S, Bb, H)   encoder outputs in their NATIVE layout (no HBM transpose)
#   h_ref   : (Bb, H)      decoder hidden state
#   out_ref : (Bb, S_pad)  lane-dense softmax over the sequence axis
# ---------------------------------------------------------------------------

def _dot_kernel(enc_ref, h_ref, out_ref):
    e = enc_ref[...]                                      # (S, Bb, H)
    g = h_ref[...]                                        # (Bb, H)
    scores_sb = jnp.sum(e * g[None, :, :], axis=-1)       # (S, Bb): VPU mul + lane reduce
    _masked_softmax_store(scores_sb.T, out_ref)           # tiny in-kernel transpose


def _general_kernel(enc_ref, h_ref, w_ref, out_ref):
    # score[b,s] = sum_i e[s,b,i] * (h @ W)[b,i]; the h·bias term is constant over S and
    # cancels in the softmax, so it is dropped.
    g = jnp.dot(h_ref[...], w_ref[...],
                preferred_element_type=jnp.float32)       # (Bb, H), once per batch block
    scores_sb = jnp.sum(enc_ref[...] * g[None, :, :], axis=-1)
    _masked_softmax_store(scores_sb.T, out_ref)


def _concat_kernel(enc_ref, h_ref, w_h_t_ref, w_e_t_ref, b_ref, v_ref,
                   out_ref, scores_sb_ref, *, s_chunk, use_bf16):
    seq, bb, hid = enc_ref.shape
    # energy = tanh( h @ W_h^T + b  +  e @ W_e^T );  score = v · energy
    c = jnp.dot(h_ref[...], w_h_t_ref[...],
                preferred_element_type=jnp.float32) + b_ref[...]     # (Bb, H), const over S
    w_e_t = w_e_t_ref[...]
    v = v_ref[...]                                                   # (1, 1, H)
    if use_bf16:
        w_e_t = w_e_t.astype(jnp.bfloat16)

    def score_chunk(e):
        # e: (cs, Bb, H) -> single big-M MXU matmul (cs*Bb, H) @ (H, H), f32 accumulation.
        cs = e.shape[0]
        if use_bf16:
            e = e.astype(jnp.bfloat16)
        pre = jnp.dot(e.reshape(cs * bb, hid), w_e_t,
                      preferred_element_type=jnp.float32).reshape(cs, bb, hid)
        energy = jnp.tanh(pre + c[None, :, :])
        return jnp.sum(energy * v, axis=-1)                          # (cs, Bb)

    if s_chunk >= seq:
        scores_sb = score_chunk(enc_ref[...])                        # (S, Bb)
    else:
        # Chunk S so only the (S, Bb) scores stay resident, not the (S, Bb, H) energy.
        def body(i, carry):
            off = pl.multiple_of(i * s_chunk, s_chunk)
            scores_sb_ref[pl.ds(off, s_chunk), :] = score_chunk(enc_ref[pl.ds(off, s_chunk)])
            return carry
        lax.fori_loop(0, seq // s_chunk, body, 0)
        scores_sb = scores_sb_ref[...]

    _masked_softmax_store(scores_sb.T, out_ref)


# ---------------------------------------------------------------------------
# Wrapper
# ---------------------------------------------------------------------------

def attn_forward(method, hidden, encoder_outputs, params=None, use_bf16_matmul=False):
    """Pallas implementation of Attn.forward.

    hidden:          (1, B, H) float32   decoder hidden state
    encoder_outputs: (S, B, H) float32   consumed in native layout (no HBM transpose)
    returns:         (B, 1, S) float32   softmax over the sequence axis
    """
    S, B, H = encoder_outputs.shape
    h_bh = hidden[0]                                       # (B, H) — cheap squeeze only

    block_b = _derive_block_b(B, S, H)
    grid = (pl.cdiv(B, block_b),)
    S_pad = ((S + 127) // 128) * 128                       # lane-dense (unmasked) stores

    enc_spec = pl.BlockSpec((S, block_b, H), lambda i: (0, i, 0))
    h_spec = pl.BlockSpec((block_b, H), lambda i: (i, 0))
    out_spec = pl.BlockSpec((block_b, S_pad), lambda i: (i, 0))

    def const_spec(shape):
        # Constant-index weights: resident across grid steps and single-buffered.
        return pl.BlockSpec(shape, _const_index_map(len(shape)),
                            pipeline_mode=pl.Buffered(1))

    scratch_shapes = []
    if method == 'dot':
        kernel = _dot_kernel
        args = (encoder_outputs, h_bh)
        in_specs = [enc_spec, h_spec]
    elif method == 'general':
        kernel = _general_kernel
        args = (encoder_outputs, h_bh, params['w'])        # bias dropped (softmax-invariant)
        in_specs = [enc_spec, h_spec, const_spec((H, H))]
    elif method == 'concat':
        w = params['w']                                    # (H, 2H), torch Linear (out, in)
        w_h_t = jnp.transpose(w[:, :H])                    # (H_in, H_out)
        w_e_t = jnp.transpose(w[:, H:])                    # (H_in, H_out)
        b = params['b'].reshape(1, H)
        v = params['v'].reshape(1, 1, H)
        kernel = functools.partial(_concat_kernel, s_chunk=_pick_s_chunk(S),
                                   use_bf16=use_bf16_matmul)
        args = (encoder_outputs, h_bh, w_h_t, w_e_t, b, v)
        in_specs = [enc_spec, h_spec, const_spec((H, H)), const_spec((H, H)),
                    const_spec((1, H)), const_spec((1, 1, H))]
        scratch_shapes = [pltpu.VMEM((S, block_b), jnp.float32)]
    else:
        raise ValueError(method, 'is not an appropriate attention method.')

    out2d = pl.pallas_call(
        kernel,
        out_shape=jax.ShapeDtypeStruct((B, S_pad), jnp.float32),
        grid=grid,
        in_specs=in_specs,
        out_specs=out_spec,
        scratch_shapes=scratch_shapes,
        compiler_params=pltpu.CompilerParams(
            dimension_semantics=("parallel",),
            vmem_limit_bytes=64 * 1024 * 1024,             # raise 16/32 MiB scoped default
        ),
    )(*args)

    return out2d[:, None, :S]                              # (B, 1, S)


# ---------------------------------------------------------------------------
# Pure-JAX reference (matches the PyTorch module exactly; correctness check)
# ---------------------------------------------------------------------------

def attn_reference(method, hidden, encoder_outputs, params=None):
    if method == 'dot':
        scores = jnp.sum(hidden * encoder_outputs, axis=2)
    elif method == 'general':
        energy = jnp.einsum('sbi,oi->sbo', encoder_outputs, params['w']) + params['b']
        scores = jnp.sum(hidden * energy, axis=2)
    elif method == 'concat':
        h = jnp.broadcast_to(hidden, encoder_outputs.shape)
        cat = jnp.concatenate([h, encoder_outputs], axis=2)
        energy = jnp.tanh(jnp.einsum('sbi,oi->sbo', cat, params['w']) + params['b'])
        scores = jnp.sum(params['v'] * energy, axis=2)
    else:
        raise ValueError(method)
    return jax.nn.softmax(scores.T, axis=1)[:, None, :]


# ---------------------------------------------------------------------------
# Main
# ---------------------------------------------------------------------------

if __name__ == "__main__":
    S, H = 8, 32                                           # seq, hidden

    key = jax.random.PRNGKey(0)
    k_h, k_e, k_wg, k_bg, k_wc, k_bc, k_v = jax.random.split(key, 7)

    bound_g = 1.0 / jnp.sqrt(jnp.float32(H))
    bound_c = 1.0 / jnp.sqrt(jnp.float32(2 * H))
    params_general = {
        'w': jax.random.uniform(k_wg, (H, H), jnp.float32, -bound_g, bound_g),
        'b': jax.random.uniform(k_bg, (H,), jnp.float32, -bound_g, bound_g),
    }
    params_concat = {
        'w': jax.random.uniform(k_wc, (H, 2 * H), jnp.float32, -bound_c, bound_c),
        'b': jax.random.uniform(k_bc, (H,), jnp.float32, -bound_c, bound_c),
        'v': jax.random.normal(k_v, (H,), jnp.float32),
    }
    configs = [('dot', None), ('general', params_general), ('concat', params_concat)]

    # B=2: single grid step; B=16: multi-step batch grid (block_b=8, megacore-friendly).
    for B in (2, 16):
        hidden = jax.random.normal(k_h, (1, B, H), dtype=jnp.float32)
        encoder_outputs = jax.random.normal(k_e, (S, B, H), dtype=jnp.float32)
        for method, params in configs:
            out = jax.block_until_ready(attn_forward(method, hidden, encoder_outputs, params))
            ref = attn_reference(method, hidden, encoder_outputs, params)
            assert out.shape == (B, 1, S), (method, out.shape)
            assert jnp.allclose(out, ref, atol=1e-4, rtol=1e-4), (method, B)
            assert jnp.allclose(jnp.sum(out, axis=2), 1.0, atol=1e-5), (method, B)

    print("KERNEL_OK")
</pallas_src>

<mosaic_0001>
module attributes {stable_mosaic.version = 11 : i64} {
  func.func @_dot_kernel(%arg0: i32, %arg1: memref<8x2x32xf32, #tpu.memory_space<vmem>>, %arg2: memref<2x32xf32, #tpu.memory_space<vmem>>, %arg3: memref<2x128xf32, #tpu.memory_space<vmem>>) attributes {dimension_semantics = [#tpu.dimension_semantics<parallel>], iteration_bounds = array<i64: 1>, scalar_prefetch = 0 : i64, scratch_operands = 0 : i64, tpu.core_type = #tpu.core_type<tc>, window_params = [{transform_indices = @transform_0, window_bounds = array<i64: 8, 2, 32>}, {transform_indices = @transform_1, window_bounds = array<i64: 2, 32>}, {transform_indices = @transform_2, window_bounds = array<i64: 2, 128>}]} {
    %c0 = arith.constant 0 : index
    %c0_0 = arith.constant 0 : index
    %c0_1 = arith.constant 0 : index
    %0 = vector.load %arg1[%c0, %c0_0, %c0_1] : memref<8x2x32xf32, #tpu.memory_space<vmem>>, vector<8x2x32xf32>
    %c0_2 = arith.constant 0 : index
    %c0_3 = arith.constant 0 : index
    %1 = vector.load %arg2[%c0_2, %c0_3] : memref<2x32xf32, #tpu.memory_space<vmem>>, vector<2x32xf32>
    %2 = vector.shape_cast %1 : vector<2x32xf32> to vector<1x2x32xf32>
    %3 = vector.broadcast %2 : vector<1x2x32xf32> to vector<8x2x32xf32>
    %4 = arith.mulf %0, %3 : vector<8x2x32xf32>
    %cst = arith.constant dense<0.000000e+00> : vector<8x2xf32>
    %5 = vector.multi_reduction <add>, %4, %cst [2] : vector<8x2x32xf32> to vector<8x2xf32>
    %6 = tpu.transpose %5, [1, 0] : vector<8x2xf32> -> vector<2x8xf32>
    %cst_4 = arith.constant -1.000000e+30 : f32
    %7 = vector.broadcast %cst_4 : f32 to vector<2x120xf32>
    %8 = tpu.concatenate %6, %7 in 1 : vector<2x8xf32>, vector<2x120xf32> -> vector<2x128xf32>
    %cst_5 = arith.constant dense<0xFF800000> : vector<2xf32>
    %9 = vector.multi_reduction <maximumf>, %8, %cst_5 [1] : vector<2x128xf32> to vector<2xf32>
    %10 = vector.shape_cast %9 : vector<2xf32> to vector<2x1xf32>
    %11 = vector.broadcast %10 : vector<2x1xf32> to vector<2x128xf32>
    %12 = arith.subf %8, %11 : vector<2x128xf32>
    %13 = math.exp %12 : vector<2x128xf32>
    %cst_6 = arith.constant dense<0.000000e+00> : vector<2xf32>
    %14 = vector.multi_reduction <add>, %13, %cst_6 [1] : vector<2x128xf32> to vector<2xf32>
    %15 = vector.shape_cast %14 : vector<2xf32> to vector<2x1xf32>
    %16 = vector.broadcast %15 : vector<2x1xf32> to vector<2x128xf32>
    %17 = arith.divf %13, %16 : vector<2x128xf32>
    %c0_7 = arith.constant 0 : index
    %c0_8 = arith.constant 0 : index
    %18 = vector.load %arg3[%c0_7, %c0_8] : memref<2x128xf32, #tpu.memory_space<vmem>>, vector<2x128xf32>
    tpu.vector_store %arg3[%c0_7, %c0_8], %17 {strides = array<i32>} : memref<2x128xf32, #tpu.memory_space<vmem>>, vector<2x128xf32>,
    return
  }
  func.func @transform_0(%arg0: i32) -> (i32, i32, i32) {
    %c0_i32 = arith.constant 0 : i32
    %c0_i32_0 = arith.constant 0 : i32
    %c0_i32_1 = arith.constant 0 : i32
    return %c0_i32, %arg0, %c0_i32_0 : i32, i32, i32
  }
  func.func @transform_1(%arg0: i32) -> (i32, i32) {
    %c0_i32 = arith.constant 0 : i32
    %c0_i32_0 = arith.constant 0 : i32
    return %arg0, %c0_i32 : i32, i32
  }
  func.func @transform_2(%arg0: i32) -> (i32, i32) {
    %c0_i32 = arith.constant 0 : i32
    %c0_i32_0 = arith.constant 0 : i32
    return %arg0, %c0_i32 : i32, i32
  }
}

</mosaic_0001>

<bundles_post_ra>
// kernel: tpu_custom_call.1
= control target key start
LH: loop header
LB: loop body
LE: loop exit
PB: predicated region body
PF: predicated region fallthrough
CT: control target
= control target key end

     0   :  { %7 = vsyncpa [#allocation3], 0  ;;  %s313_s0 = inlined_call_operand.hbm [shape: f32[8,2,32], index: 0, kind: input, shape index: {}]   ;;  %s314_s1 = inlined_call_operand.hbm [shape: f32[2,32], index: 1, kind: input, shape index: {}]   ;;  %s315_s2 = inlined_call_operand.hbm [shape: f32[2,128], index: 2, kind: output, shape index: {}]  }
   0x1   :  { %8 = vsyncpa [#allocation6], 0 }
   0x2   :  { %9 = vsyncpa [#allocation4], 0  ;;  %s276_s9 = smov [#allocation2]  }
   0x3   :  { %s15_s10 = sshll.u32 %s276_s9, 4  ;;  %s16_s10 = int_to_ptr.vmem [resolvable:$true] %s15_s10 }
   0x4   :  { %s218_s11 = scalar_lea.vmem %s16_s10, 256  ;;  %p223_p1 = scmp.lt.s32.totalorder %s16_s10, %s16_s10 }
   0x5   :  { %p219_p0 = scmp.ne.s32.totalorder %s16_s10, %s218_s11  ;;  %p224_p2 = scmp.lt.s32.totalorder %s218_s11, %s218_s11 }
   0x7   :  { %p225_p3 = por %p224_p2, %p223_p1 }
   0x9   :  { %p226_p4 = pnand %p225_p3, %p219_p0 }
   0xb   :  { %229 = shalt.err (!%p226_p4)
}
   0xc   :  { %s277_s12 = smov 32   ;;  %s278_s13 = smov 2  }
   0xd   :  { %21 = dma.hbm_to_vmem [thread:$0]  %s313_s0, 256, %s16_s10, [#allocation3], %s277_s12, %s277_s12, %s278_s13  }
   0xe   :  { %s279_s16 = smov [#allocation5]  }
   0xf   :  { %s28_s17 = sshll.u32 %s279_s16, 4  ;;  %s29_s17 = int_to_ptr.vmem [resolvable:$true] %s28_s17 }
  0x10   :  { %s238_s18 = scalar_lea.vmem %s29_s17, 32  ;;  %p243_p6 = scmp.lt.s32.totalorder %s29_s17, %s29_s17 }
  0x11   :  { %p239_p5 = scmp.ne.s32.totalorder %s29_s17, %s238_s18  ;;  %p244_p7 = scmp.lt.s32.totalorder %s238_s18, %s238_s18 }
  0x13   :  { %p245_p8 = por %p244_p7, %p243_p6 }
  0x15   :  { %p246_p9 = pnand %p245_p8, %p239_p5 }
  0x17   :  { %249 = shalt.err (!%p246_p9)
}
  0x18   :  { %31 = dma.hbm_to_vmem [thread:$0]  %s314_s1, 32, %s29_s17, [#allocation6]  }
  0x19   :  { %270 = dma.done.wait [#allocation3], 256  }
  0x1a   :  { %271 = vsyncadd [#allocation3], 4294967040 }
  0x1b   :  { %272 = dma.done.wait [#allocation6], 32  }
  0x1c   :  { %273 = vsyncadd [#allocation6], 4294967264  ;;  %vm55_vm0 = vcmask 254976   ;;  %v38_v0 = vld [vmem:[#allocation2] sm:$0x3]  ;;  %v88_v25 = vlaneseq  ;;  %vm122_vm1 = vcmask 1041409  }
  0x1d   :  { %v46_v1 = vld [vmem:[#allocation5] sm:$0x3]  ;;  %v40_v2 = vld [vmem:[#allocation2 + $0x4] sm:$0x3]  ;;  %v39_v5 = vld [vmem:[#allocation2 + $0x2] sm:$0x3] }
  0x1e   :  { %v47_v3 = vmul.f32 %v46_v1, %v38_v0  ;;  %v49_v4 = vmul.f32 %v46_v1, %v40_v2  ;;  %v41_v6 = vld [vmem:[#allocation2 + $0x6] sm:$0x3]  ;;  %v48_v7 = vmul.f32 %v46_v1, %v39_v5  ;;  %v42_v9 = vld [vmem:[#allocation2 + $0x8] sm:$0x3]  ;;  %v43_v10 = vld [vmem:[#allocation2 + $0xa] sm:$0x3] }
  0x1f   :  { %v50_v8 = vmul.f32 %v46_v1, %v41_v6  ;;  %v51_v15 = vmul.f32 %v46_v1, %v42_v9  ;;  %v52_v16 = vmul.f32 %v46_v1, %v43_v10  ;;  %v44_v17 = vld [vmem:[#allocation2 + $0xc] sm:$0x3]  ;;  %v45_v18 = vld [vmem:[#allocation2 + $0xe] sm:$0x3]  ;;  %v89_v26 = vand.u32 127, %v88_v25  ;;  %s280_s0 = smov [#allocation7]  }
  0x20   :  { %v56_v11 = vsel %vm55_vm0, %v47_v3, 0.0  ;;  %v62_v12 = vsel %vm55_vm0, %v49_v4, 0.0  ;;  %v59_v13 = vsel %vm55_vm0, %v48_v7, 0.0  ;;  %v53_v21 = vmul.f32 %v46_v1, %v44_v17  ;;  %s190_s1 = sshll.u32 %s280_s0, 4  ;;  %s191_s1 = int_to_ptr.vmem [resolvable:$true] %s190_s1 }
  0x21   :  { %57 = vadd.xlane.f32.xlu0 %v56_v11  ;;  %63 = vadd.xlane.f32.xlu1 %v62_v12  ;;  %v65_v14 = vsel %vm55_vm0, %v50_v8, 0.0  ;;  %v68_v19 = vsel %vm55_vm0, %v51_v15, 0.0  ;;  %v71_v20 = vsel %vm55_vm0, %v52_v16, 0.0  ;;  %v54_v22 = vmul.f32 %v46_v1, %v45_v18  ;;  %s250_s21 = scalar_lea.vmem %s191_s1, 32  ;;  %p255_p11 = scmp.lt.s32.totalorder %s191_s1, %s191_s1 }
  0x22   :  { %v74_v23 = vsel %vm55_vm0, %v53_v21, 0.0  ;;  %v91_v27 = vshrl.u32 %v88_v25, 7  ;;  %vm124_vm2 = vcmask 1042434   ;;  %vm126_vm3 = vcmask 1043459   ;;  %p251_p10 = scmp.ne.s32.totalorder %s191_s1, %s250_s21  ;;  %p256_p12 = scmp.lt.s32.totalorder %s250_s21, %s250_s21 }
  0x23   :  { %v77_v24 = vsel %vm55_vm0, %v54_v22, 0.0  ;;  %vm128_vm4 = vcmask 1044484   ;;  %vm130_vm5 = vcmask 1045509   ;;  %vm132_vm6 = vcmask 1046534  }
  0x24   :  { %v92_v30 = vsub.s32 %v89_v26, %v91_v27  ;;  %vm134_vm7 = vcmask 1047559   ;;  %vm169_vm8 = vcmask 64512   ;;  %vm171_vm9 = vcmask 1041408   ;;  %p257_p13 = por %p256_p12, %p255_p11 }
  0x25   :  { %60 = vadd.xlane.f32.xlu0 %v59_v13  ;;  %66 = vadd.xlane.f32.xlu1 %v65_v14 }
  0x26   :  { %p258_p0 = pnand %p257_p13, %p251_p10 }
  0x29   :  { %69 = vadd.xlane.f32.xlu0 %v68_v19  ;;  %72 = vadd.xlane.f32.xlu1 %v71_v20 }
  0x2d   :  { %75 = vadd.xlane.f32.xlu0 %v74_v23  ;;  %78 = vadd.xlane.f32.xlu1 %v77_v24 }
  0xaa   :  { %v58_v28 = vpop.xlane.xlu0 %57  ;;  %v64_v29 = vpop.xlane.xlu1 %63 }
  0xab   :  { %v93_v33 = vrot.slane %v58_v28, %v92_v30  ;;  %v101_v36 = vrot.slane %v64_v29, %v92_v30 }
  0xae   :  { %v61_v31 = vpop.xlane.xlu0 %60  ;;  %v67_v32 = vpop.xlane.xlu1 %66 }
  0xaf   :  { %v97_v34 = vrot.slane %v61_v31, %v92_v30  ;;  %v105_v35 = vrot.slane %v67_v32, %v92_v30 }
  0xb1   :  { %v123_v37 = vsel %vm122_vm1, %v97_v34, %v93_v33 }
  0xb2   :  { %v125_v38 = vsel %vm124_vm2, %v101_v36, %v123_v37  ;;  %v70_v39 = vpop.xlane.xlu0 %69  ;;  %v73_v40 = vpop.xlane.xlu1 %72 }
  0xb3   :  { %v127_v41 = vsel %vm126_vm3, %v105_v35, %v125_v38  ;;  %v109_v42 = vrot.slane %v70_v39, %v92_v30  ;;  %v113_v43 = vrot.slane %v73_v40, %v92_v30 }
  0xb5   :  { %v129_v44 = vsel %vm128_vm4, %v109_v42, %v127_v41 }
  0xb6   :  { %v76_v45 = vpop.xlane.xlu0 %75  ;;  %v79_v46 = vpop.xlane.xlu1 %78  ;;  %v131_v49 = vsel %vm130_vm5, %v113_v43, %v129_v44 }
  0xb7   :  { %v117_v47 = vrot.slane %v76_v45, %v92_v30  ;;  %v121_v48 = vrot.slane %v79_v46, %v92_v30 }
  0xb9   :  { %v133_v50 = vsel %vm132_vm6, %v117_v47, %v131_v49 }
  0xba   :  { %v135_v51 = vsel %vm134_vm7, %v121_v48, %v133_v50 }
  0xbb   :  { %137 = vxpose.xlu0.b32.start.end [1/1] (short) (narrow) %v135_v51, 8 }
 0x137   :  { %v153_v52 = vpop.trf.xlu0 }
 0x138   :  { %v170_v53 = vsel %vm169_vm8, %v153_v52, -1e+30 }
 0x139   :  { %v172_v54 = vsel %vm171_vm9, %v170_v53, -inf }
 0x13a   :  { %173 = vmax.xlane.f32.xlu1 %v172_v54 }
 0x1c3   :  { %v174_v55 = vpop.xlane.xlu1 %173 }
 0x1c4   :  { %v175_v56 = vsub.f32 %v170_v53, %v174_v55 }
 0x1c6   :  { %v176_v57 = vmul.f32 1.442695, %v175_v56 }
 0x1c8   :  { %206 = vpow2.f32 %v176_v57 }
 0x1d5   :  { %v207_v58 = vpop.eup %206 }
 0x1d6   :  { %v178_v59 = vsel %vm171_vm9, %v207_v58, 0.0 }
 0x1d7   :  { %179 = vadd.xlane.f32.xlu1 %v178_v59 }
 0x260   :  { %v180_v60 = vpop.xlane.xlu1 %179 }
 0x261   :  { %208 = vrcp.f32 %v180_v60 }
 0x26e   :  { %v209_v61 = vpop.eup %208 }
 0x26f   :  { %v182_v62 = vmul.f32 %v209_v61, %v207_v58 }
 0x271   :  { %183 = vst [vmem:[#allocation7] sm:$0x3] %v182_v62 }
 0x272   :  { %261 = shalt.err (!%p258_p0)
}
 0x273   :  { %193 = dma.vmem_to_hbm [thread:$0]  %s191_s1, 32, %s315_s2, [#allocation4]  }
 0x274   :  { %274 = dma.done.wait [#allocation4], 32  }
 0x275   :  { %275 = vsyncadd [#allocation4], 4294967264 }
 0x276   :  { %197 = vsyncpa [#allocation3], 1 }
 0x277   :  { %198 = vsyncpa [#allocation6], 1 }
 0x278   :  { %199 = vsyncpa [#allocation4], 1 }

</bundles_post_ra>
